<compile_context>
chip_gen: v7x
topology: tpu7x:2x2x1
jax: 0.10.0
libtpu: 0.0.40
codegen_flags: <defaults>
</compile_context>

<pallas_src>
import functools

import jax
import jax.numpy as jnp
from jax import lax
from jax.experimental import pallas as pl
from jax.experimental.pallas import tpu as pltpu

LANES = 128
SUBLANES = 8
MAX_ROW_TILE = 8192           # (8192,128) f32 block = 4 MiB; 3 inputs x 2 bufs = 24 MiB
VMEM_LIMIT_BYTES = 48 << 20   # > default scoped limits, < v7x's 64 MiB physical VMEM


def _cdiv(a, b):
    return (a + b - 1) // b


def _round_up(a, m):
    return _cdiv(a, m) * m


def _wmse_kernel(x_ref, t_ref, s_ref, o_ref, acc_ref, *,
                 w_offset, w_half_delta, inv_n,
                 row_tile, total_rows, steps_per_part, may_be_ragged):
    p = pl.program_id(0)   # partition ("parallel" axis -> one per TensorCore on v7x)
    i = pl.program_id(1)   # reduction step within the partition ("arbitrary")

    @pl.when(i == 0)
    def _():
        acc_ref[...] = jnp.zeros_like(acc_ref)

    # Upcast in-kernel (cheap VPU work) so bf16 inputs stay bf16 over HBM.
    x = x_ref[...].astype(jnp.float32)
    t = t_ref[...].astype(jnp.float32)
    s = s_ref[...].astype(jnp.float32)

    # Trace-time-folded weight algebra:
    #   sigmoid(s)*(max_land - min_sea) + min_sea
    #     == (min_sea + 0.5*delta) + (0.5*delta) * tanh(0.5*s)
    # One EUP transcendental (tanh), one mul, one add per vreg.
    w = w_offset + w_half_delta * jnp.tanh(0.5 * s)

    diff = x - t
    wse = w * diff * diff

    def tile_sum(v):
        # Reduce the (row_tile, 128) tile to one (8,128) vreg with pure VPU adds
        # (no per-step cross-lane XLU reduce).
        return jnp.sum(v.reshape(row_tile // SUBLANES, SUBLANES, LANES), axis=0)

    if not may_be_ragged:
        # Every block is full: no masking anywhere (static fast path).
        acc_ref[...] += tile_sum(wse)
    else:
        # Mask only on blocks that can actually be ragged / clamped-duplicate.
        base_row = (p * steps_per_part + i) * row_tile
        is_full = base_row + row_tile <= total_rows

        @pl.when(is_full)
        def _():
            acc_ref[...] += tile_sum(wse)

        @pl.when(jnp.logical_not(is_full))
        def _():
            # Logical row index (from program ids, NOT the clamped block index)
            # zeroes out ragged tails, duplicate clamped blocks, and any garbage
            # in the out-of-bounds part of a partial DMA block.  Keep the select
            # immediately adjacent to the accumulate.
            row_ids = base_row + lax.broadcasted_iota(
                jnp.int32, (row_tile, LANES), 0)
            masked = jnp.where(row_ids < total_rows, wse, 0.0)
            acc_ref[...] += tile_sum(masked)

    @pl.when(i == pl.num_programs(1) - 1)
    def _():
        # Fold the 1/N mean normalization into the single per-partition writeout.
        o_ref[...] = acc_ref[...] * inv_n


def sdf_weighted_mse_loss(inp, target, sdf,
                          max_land_weight=1.0, min_sea_weight=0.5):
    """Pallas implementation of SDFWeightedMSELoss.forward (returns f32 scalar)."""
    assert inp.shape == target.shape == sdf.shape
    n_elements = inp.size

    def sublane_mult(dt):
        bits = jnp.dtype(dt).itemsize * 8
        return SUBLANES * max(1, 32 // bits)   # f32->8, bf16->16, int8/fp8->32

    tile_mult = max(sublane_mult(inp.dtype), sublane_mult(target.dtype),
                    sublane_mult(sdf.dtype))

    def to_slab(a):
        flat = jnp.reshape(a, (-1,))
        pad = (-flat.size) % LANES
        if pad:  # static: at most 127 zeros, only when size % 128 != 0
            flat = jnp.pad(flat, (0, pad))
        return flat.reshape(-1, LANES)

    x2 = to_slab(inp)
    t2 = to_slab(target)
    s2 = to_slab(sdf)
    rows = x2.shape[0]

    # Big, VMEM-friendly row tile; never (much) larger than the slab itself.
    row_tile = min(MAX_ROW_TILE, _round_up(rows, tile_mult))
    total_blocks = _cdiv(rows, row_tile)
    num_parts = 2 if total_blocks >= 2 else 1     # 2-way split only when it helps
    steps_per_part = _cdiv(total_blocks, num_parts)
    # Any ragged last block or clamped duplicate block?  (Static flag.)
    may_be_ragged = (num_parts * steps_per_part * row_tile != rows)

    delta = float(max_land_weight) - float(min_sea_weight)
    kernel = functools.partial(
        _wmse_kernel,
        w_offset=float(min_sea_weight) + 0.5 * delta,   # compile-time constants
        w_half_delta=0.5 * delta,
        inv_n=1.0 / float(n_elements),
        row_tile=row_tile,
        total_rows=rows,
        steps_per_part=steps_per_part,
        may_be_ragged=may_be_ragged,
    )

    def in_map(p, i):
        # Clamp so the DMA never targets a fully out-of-range block; the kernel
        # masks such duplicate blocks to zero using the *logical* row index.
        return (jnp.minimum(p * steps_per_part + i, total_blocks - 1), 0)

    in_spec = pl.BlockSpec((row_tile, LANES), in_map)

    partials = pl.pallas_call(
        kernel,
        out_shape=jax.ShapeDtypeStruct((num_parts, SUBLANES, LANES), jnp.float32),
        grid_spec=pltpu.PrefetchScalarGridSpec(
            num_scalar_prefetch=0,
            grid=(num_parts, steps_per_part),
            in_specs=[in_spec, in_spec, in_spec],
            out_specs=pl.BlockSpec((None, SUBLANES, LANES), lambda p, i: (p, 0, 0)),
            scratch_shapes=[pltpu.VMEM((SUBLANES, LANES), jnp.float32)],
        ),
        compiler_params=pltpu.CompilerParams(
            # Parallel partition axis (v7x megacore), sequential reduction axis.
            dimension_semantics=("parallel", "arbitrary"),
            vmem_limit_bytes=VMEM_LIMIT_BYTES,
        ),
    )(x2, t2, s2)

    # Tiny final reduction (num_parts*8*128 elements); 1/N already applied.
    return jnp.sum(partials)


def _reference(inp, target, sdf, max_land_weight=1.0, min_sea_weight=0.5):
    w = jax.nn.sigmoid(sdf.astype(jnp.float32)) * (max_land_weight - min_sea_weight) \
        + min_sea_weight
    d = inp.astype(jnp.float32) - target.astype(jnp.float32)
    return jnp.mean(w * d * d)


def _check(shape, dtype, key):
    k1, k2, k3 = jax.random.split(key, 3)
    inp = jax.random.normal(k1, shape, dtype=dtype)
    target = jax.random.normal(k2, shape, dtype=dtype)
    sdf = jax.random.normal(k3, shape, dtype=dtype) * 3.0
    loss = sdf_weighted_mse_loss(inp, target, sdf,
                                 max_land_weight=1.0, min_sea_weight=0.5)
    loss = jax.block_until_ready(loss)
    ref = _reference(inp, target, sdf, 1.0, 0.5)
    assert jnp.allclose(loss, ref, rtol=1e-3, atol=1e-6), (shape, dtype, loss, ref)


if __name__ == "__main__":
    key = jax.random.PRNGKey(0)
    k_main, k_ragged, k_big = jax.random.split(key, 3)

    # Main small NCHW case (exact, single full block).
    _check((2, 4, 16, 16), jnp.float32, k_main)
    # Odd size -> exercises lane padding + ragged-block mask path.
    _check((2, 4, 16, 20), jnp.float32, k_ragged)
    # Larger case -> exercises multi-block / 2-partition path + big tile + VMEM limit.
    _check((3, 4, 256, 512), jnp.float32, k_big)

    print("KERNEL_OK")
</pallas_src>

<mosaic_0001>
module attributes {stable_mosaic.version = 11 : i64} {
  func.func @_wmse_kernel(%arg0: i32, %arg1: i32, %arg2: memref<16x128xf32, #tpu.memory_space<vmem>>, %arg3: memref<16x128xf32, #tpu.memory_space<vmem>>, %arg4: memref<16x128xf32, #tpu.memory_space<vmem>>, %arg5: memref<1x8x128xf32, #tpu.memory_space<vmem>>, %arg6: memref<8x128xf32, #tpu.memory_space<vmem>>) attributes {dimension_semantics = [#tpu.dimension_semantics<parallel>, #tpu.dimension_semantics<arbitrary>], iteration_bounds = array<i64: 1, 1>, scalar_prefetch = 0 : i64, scratch_operands = 1 : i64, tpu.core_type = #tpu.core_type<tc>, window_params = [{transform_indices = @transform_0, window_bounds = array<i64: 16, 128>}, {transform_indices = @transform_1, window_bounds = array<i64: 16, 128>}, {transform_indices = @transform_2, window_bounds = array<i64: 16, 128>}, {transform_indices = @transform_3, window_bounds = array<i64: 1, 8, 128>}]} {
    %c0_i32 = arith.constant 0 : i32
    %0 = arith.cmpi eq, %arg1, %c0_i32 : i32
    %1 = arith.extui %0 : i1 to i32
    %c0_i32_0 = arith.constant 0 : i32
    %2 = arith.cmpi ne, %1, %c0_i32_0 : i32
    scf.if %2 {
      %cst_15 = arith.constant 0.000000e+00 : f32
      %24 = vector.broadcast %cst_15 : f32 to vector<8x128xf32>
      %c0_16 = arith.constant 0 : index
      %c0_17 = arith.constant 0 : index
      %25 = vector.load %arg6[%c0_16, %c0_17] : memref<8x128xf32, #tpu.memory_space<vmem>>, vector<8x128xf32>
      tpu.vector_store %arg6[%c0_16, %c0_17], %24 {strides = array<i32>} : memref<8x128xf32, #tpu.memory_space<vmem>>, vector<8x128xf32>,
    } else {
    }
    %c0 = arith.constant 0 : index
    %c0_1 = arith.constant 0 : index
    %3 = vector.load %arg2[%c0, %c0_1] : memref<16x128xf32, #tpu.memory_space<vmem>>, vector<16x128xf32>
    %c0_2 = arith.constant 0 : index
    %c0_3 = arith.constant 0 : index
    %4 = vector.load %arg3[%c0_2, %c0_3] : memref<16x128xf32, #tpu.memory_space<vmem>>, vector<16x128xf32>
    %c0_4 = arith.constant 0 : index
    %c0_5 = arith.constant 0 : index
    %5 = vector.load %arg4[%c0_4, %c0_5] : memref<16x128xf32, #tpu.memory_space<vmem>>, vector<16x128xf32>
    %cst = arith.constant 5.000000e-01 : f32
    %6 = vector.broadcast %cst : f32 to vector<16x128xf32>
    %7 = arith.mulf %6, %5 : vector<16x128xf32>
    %8 = math.tanh %7 : vector<16x128xf32>
    %cst_6 = arith.constant 2.500000e-01 : f32
    %9 = vector.broadcast %cst_6 : f32 to vector<16x128xf32>
    %10 = arith.mulf %9, %8 : vector<16x128xf32>
    %cst_7 = arith.constant 7.500000e-01 : f32
    %11 = vector.broadcast %cst_7 : f32 to vector<16x128xf32>
    %12 = arith.addf %11, %10 : vector<16x128xf32>
    %13 = arith.subf %3, %4 : vector<16x128xf32>
    %14 = arith.mulf %12, %13 : vector<16x128xf32>
    %15 = arith.mulf %14, %13 : vector<16x128xf32>
    %c0_8 = arith.constant 0 : index
    %c0_9 = arith.constant 0 : index
    %16 = vector.load %arg6[%c0_8, %c0_9] : memref<8x128xf32, #tpu.memory_space<vmem>>, vector<8x128xf32>
    %17 = vector.shape_cast %15 : vector<16x128xf32> to vector<2x8x128xf32>
    %cst_10 = arith.constant dense<0.000000e+00> : vector<8x128xf32>
    %18 = vector.multi_reduction <add>, %17, %cst_10 [0] : vector<2x8x128xf32> to vector<8x128xf32>
    %19 = arith.addf %16, %18 : vector<8x128xf32>
    %c0_11 = arith.constant 0 : index
    %c0_12 = arith.constant 0 : index
    %20 = vector.load %arg6[%c0_11, %c0_12] : memref<8x128xf32, #tpu.memory_space<vmem>>, vector<8x128xf32>
    tpu.vector_store %arg6[%c0_11, %c0_12], %19 {strides = array<i32>} : memref<8x128xf32, #tpu.memory_space<vmem>>, vector<8x128xf32>,
    %c0_i32_13 = arith.constant 0 : i32
    %21 = arith.cmpi eq, %arg1, %c0_i32_13 : i32
    %22 = arith.extui %21 : i1 to i32
    %c0_i32_14 = arith.constant 0 : i32
    %23 = arith.cmpi ne, %22, %c0_i32_14 : i32
    scf.if %23 {
      %c0_15 = arith.constant 0 : index
      %c0_16 = arith.constant 0 : index
      %24 = vector.load %arg6[%c0_15, %c0_16] : memref<8x128xf32, #tpu.memory_space<vmem>>, vector<8x128xf32>
      %cst_17 = arith.constant 4.8828125E-4 : f32
      %25 = vector.broadcast %cst_17 : f32 to vector<8x128xf32>
      %26 = arith.mulf %24, %25 : vector<8x128xf32>
      %c0_18 = arith.constant 0 : index
      %c0_19 = arith.constant 0 : index
      %c0_20 = arith.constant 0 : index
      %27 = vector.load %arg5[%c0_18, %c0_19, %c0_20] : memref<1x8x128xf32, #tpu.memory_space<vmem>>, vector<1x8x128xf32>
      %28 = vector.shape_cast %27 : vector<1x8x128xf32> to vector<8x128xf32>
      %29 = vector.shape_cast %26 : vector<8x128xf32> to vector<1x8x128xf32>
      tpu.vector_store %arg5[%c0_18, %c0_19, %c0_20], %29 {strides = array<i32>} : memref<1x8x128xf32, #tpu.memory_space<vmem>>, vector<1x8x128xf32>,
    } else {
    }
    return
  }
  func.func @transform_0(%arg0: i32, %arg1: i32) -> (i32, i32) {
    %c1_i32 = arith.constant 1 : i32
    %0 = arith.muli %arg0, %c1_i32 : i32
    %1 = arith.addi %0, %arg1 : i32
    %c0_i32 = arith.constant 0 : i32
    %2 = arith.minsi %1, %c0_i32 : i32
    %c0_i32_0 = arith.constant 0 : i32
    %c0_i32_1 = arith.constant 0 : i32
    return %2, %c0_i32_0 : i32, i32
  }
  func.func @transform_1(%arg0: i32, %arg1: i32) -> (i32, i32) {
    %c1_i32 = arith.constant 1 : i32
    %0 = arith.muli %arg0, %c1_i32 : i32
    %1 = arith.addi %0, %arg1 : i32
    %c0_i32 = arith.constant 0 : i32
    %2 = arith.minsi %1, %c0_i32 : i32
    %c0_i32_0 = arith.constant 0 : i32
    %c0_i32_1 = arith.constant 0 : i32
    return %2, %c0_i32_0 : i32, i32
  }
  func.func @transform_2(%arg0: i32, %arg1: i32) -> (i32, i32) {
    %c1_i32 = arith.constant 1 : i32
    %0 = arith.muli %arg0, %c1_i32 : i32
    %1 = arith.addi %0, %arg1 : i32
    %c0_i32 = arith.constant 0 : i32
    %2 = arith.minsi %1, %c0_i32 : i32
    %c0_i32_0 = arith.constant 0 : i32
    %c0_i32_1 = arith.constant 0 : i32
    return %2, %c0_i32_0 : i32, i32
  }
  func.func @transform_3(%arg0: i32, %arg1: i32) -> (i32, i32, i32) {
    %c0_i32 = arith.constant 0 : i32
    %c0_i32_0 = arith.constant 0 : i32
    %c0_i32_1 = arith.constant 0 : i32
    return %arg0, %c0_i32, %c0_i32_0 : i32, i32, i32
  }
}

</mosaic_0001>

<bundles_post_ra>
// kernel: tpu_custom_call.1
= control target key start
LH: loop header
LB: loop body
LE: loop exit
PB: predicated region body
PF: predicated region fallthrough
CT: control target
= control target key end

     0   :  { %8 = vsyncpa [#allocation4], 0  ;;  %s337_s0 = inlined_call_operand.hbm [shape: f32[16,128], index: 0, kind: input, shape index: {}]   ;;  %s338_s1 = inlined_call_operand.hbm [shape: f32[16,128], index: 1, kind: input, shape index: {}]   ;;  %s339_s2 = inlined_call_operand.hbm [shape: f32[16,128], index: 2, kind: input, shape index: {}]   ;;  %s340_s3 = inlined_call_operand.hbm [shape: f32[1,8,128], index: 3, kind: output, shape index: {}]  }
   0x1   :  { %9 = vsyncpa [#allocation7], 0 }
   0x2   :  { %10 = vsyncpa [#allocation5], 0  ;;  %s247_s12 = smov [#allocation6]   ;;  %s248_s14 = smov [#allocation3]  }
   0x3   :  { %s40_s13 = sshll.u32 %s247_s12, 4  ;;  %s22_s15 = sshll.u32 %s248_s14, 4  ;;  %s41_s13 = int_to_ptr.vmem [resolvable:$true] %s40_s13  ;;  %s273_s15 = int_to_ptr.vmem [resolvable:$true] %s22_s15 }
   0x4   :  { %s153_s18 = scalar_lea.hbm %s338_s1, 256 }
   0x5   :  { %p154_p0 = scmp.ne.s32.totalorder %s338_s1, %s153_s18  ;;  %p157_p1 = scmp.lt.u32.totalorder %s153_s18, %s338_s1 }
   0x7   :  { %p159_p2 = pnand %p157_p1, %p154_p0 }
   0x9   :  { %162 = shalt.err (!%p159_p2)
}
   0xa   :  { %s163_s23 = scalar_lea.vmem %s41_s13, 256  ;;  %p168_p4 = scmp.lt.s32.totalorder %s41_s13, %s41_s13 }
   0xb   :  { %p164_p3 = scmp.ne.s32.totalorder %s41_s13, %s163_s23  ;;  %p169_p5 = scmp.lt.s32.totalorder %s163_s23, %s163_s23 }
   0xd   :  { %p170_p6 = por %p169_p5, %p168_p4 }
   0xf   :  { %p171_p7 = pnand %p170_p6, %p164_p3 }
  0x11   :  { %174 = shalt.err (!%p171_p7)
}
  0x12   :  { %s249_s24 = smov 128   ;;  %s250_s25 = smov 8  }
  0x13   :  { %46 = dma.hbm_to_vmem [thread:$0]  %s338_s1, 256, %s41_s13, [#allocation7], %s249_s24, %s249_s24, %s250_s25  }
  0x14   :  { %s175_s30 = scalar_lea.hbm %s337_s0, 256 }
  0x15   :  { %p176_p8 = scmp.ne.s32.totalorder %s337_s0, %s175_s30  ;;  %p179_p9 = scmp.lt.u32.totalorder %s175_s30, %s337_s0 }
  0x17   :  { %p181_p10 = pnand %p179_p9, %p176_p8 }
  0x19   :  { %184 = shalt.err (!%p181_p10)
}
  0x1a   :  { %s185_s8 = scalar_lea.vmem %s273_s15, 256  ;;  %p190_p12 = scmp.lt.s32.totalorder %s273_s15, %s273_s15 }
  0x1b   :  { %p186_p11 = scmp.ne.s32.totalorder %s273_s15, %s185_s8  ;;  %p191_p13 = scmp.lt.s32.totalorder %s185_s8, %s185_s8 }
  0x1d   :  { %p192_p0 = por %p191_p13, %p190_p12 }
  0x1f   :  { %p193_p1 = pnand %p192_p0, %p186_p11 }
  0x21   :  { %196 = shalt.err (!%p193_p1)
}
  0x22   :  { %28 = dma.hbm_to_vmem [thread:$0]  %s337_s0, 256, %s273_s15, [#allocation4], %s249_s24, %s249_s24, %s250_s25  }
  0x23   :  { %s251_s10 = smov [#allocation8]   ;;  %s197_s14 = scalar_lea.hbm %s339_s2, 256 }
  0x24   :  { %s58_s11 = sshll.u32 %s251_s10, 4  ;;  %p198_p2 = scmp.ne.s32.totalorder %s339_s2, %s197_s14  ;;  %s59_s11 = int_to_ptr.vmem [resolvable:$true] %s58_s11 }
  0x25   :  { %p201_p3 = scmp.lt.u32.totalorder %s197_s14, %s339_s2 }
  0x27   :  { %p203_p4 = pnand %p201_p3, %p198_p2 }
  0x29   :  { %206 = shalt.err (!%p203_p4)
}
  0x2a   :  { %s207_s20 = scalar_lea.vmem %s59_s11, 256  ;;  %p212_p6 = scmp.lt.s32.totalorder %s59_s11, %s59_s11 }
  0x2b   :  { %p208_p5 = scmp.ne.s32.totalorder %s59_s11, %s207_s20  ;;  %p213_p7 = scmp.lt.s32.totalorder %s207_s20, %s207_s20 }
  0x2d   :  { %p214_p8 = por %p213_p7, %p212_p6 }
  0x2f   :  { %p215_p9 = pnand %p214_p8, %p208_p5 }
  0x31   :  { %218 = shalt.err (!%p215_p9)
}
  0x32   :  { %64 = dma.hbm_to_vmem [thread:$0]  %s339_s2, 256, %s59_s11, [#allocation7], %s249_s24, %s249_s24, %s250_s25  }
  0x33   :  { %241 = dma.done.wait [#allocation4], 256  }
  0x34   :  { %242 = vsyncadd [#allocation4], 4294967040 }
  0x35   :  { %243 = dma.done.wait [#allocation7], 512  }
  0x36   :  { %244 = vsyncadd [#allocation7], 4294966784  ;;  %v95_v0 = vld [vmem:[#allocation8] sm:$0xff]  ;;  %v96_v1 = vld [vmem:[#allocation8 + $0x8] sm:$0xff]  ;;  %s252_s2 = smov [#allocation9]  }
  0x37   :  { %v97_v2 = vmul.f32 0.5, %v95_v0  ;;  %v98_v3 = vmul.f32 0.5, %v96_v1  ;;  %v91_v4 = vld [vmem:[#allocation3] sm:$0xff]  ;;  %v93_v5 = vld [vmem:[#allocation6] sm:$0xff]  ;;  %v92_v6 = vld [vmem:[#allocation3 + $0x8] sm:$0xff]  ;;  %s127_s21 = sshll.u32 %s252_s2, 4  ;;  %s128_s21 = int_to_ptr.vmem [resolvable:$true] %s127_s21 }
  0x38   :  { %v94_v7 = vld [vmem:[#allocation6 + $0x8] sm:$0xff]  ;;  %v105_v11 = vsub.f32 %v91_v4, %v93_v5  ;;  %s219_s22 = scalar_lea.vmem %s128_s21, 128  ;;  %p224_p11 = scmp.lt.s32.totalorder %s128_s21, %s128_s21 }
  0x39   :  { %149 = vtanh.f32 %v97_v2  ;;  %v106_v13 = vsub.f32 %v92_v6, %v94_v7  ;;  %p220_p10 = scmp.ne.s32.totalorder %s128_s21, %s219_s22  ;;  %p225_p12 = scmp.lt.s32.totalorder %s219_s22, %s219_s22 }
  0x3a   :  { %151 = vtanh.f32 %v98_v3 }
  0x3b   :  { %p226_p13 = por %p225_p12, %p224_p11 }
  0x3d   :  { %p227_p0 = pnand %p226_p13, %p220_p10 }
  0x43   :  { %v150_v8 = vpop.eup %149 }
  0x44   :  { %v152_v9 = vpop.eup %151  ;;  %v101_v10 = vmul.f32 0.25, %v150_v8 }
  0x45   :  { %v102_v12 = vmul.f32 0.25, %v152_v9 }
  0x46   :  { %v103_v14 = vadd.f32 0.75, %v101_v10 }
  0x47   :  { %v104_v15 = vadd.f32 0.75, %v102_v12 }
  0x48   :  { %v107_v16 = vmul.f32 %v105_v11, %v103_v14 }
  0x49   :  { %v108_v17 = vmul.f32 %v106_v13, %v104_v15 }
  0x4a   :  { %v109_v18 = vmul.f32 %v107_v16, %v105_v11 }
  0x4b   :  { %v110_v19 = vmul.f32 %v108_v17, %v106_v13 }
  0x4d   :  { %v112_v20 = vadd.f32 %v110_v19, %v109_v18 }
  0x4f   :  { %v119_v21 = vmul.f32 0.00048828125, %v112_v20 }
  0x51   :  { %120 = vst [vmem:[#allocation9] sm:$0xff] %v119_v21 }
  0x52   :  { %230 = shalt.err (!%p227_p0)
}
  0x53   :  { %s231_s25 = scalar_lea.hbm %s340_s3, 128 }
  0x54   :  { %p232_p1 = scmp.ne.s32.totalorder %s340_s3, %s231_s25  ;;  %p235_p2 = scmp.lt.u32.totalorder %s231_s25, %s340_s3 }
  0x56   :  { %p237_p3 = pnand %p235_p2, %p232_p1 }
  0x58   :  { %240 = shalt.err (!%p237_p3)
}
  0x59   :  { %130 = dma.vmem_to_hbm [thread:$0]  %s128_s21, 128, %s340_s3, [#allocation5]  }
  0x5a   :  { %245 = dma.done.wait [#allocation5], 128  }
  0x5b   :  { %246 = vsyncadd [#allocation5], 4294967168 }
  0x5c   :  { %134 = vsyncpa [#allocation4], 1 }
  0x5d   :  { %135 = vsyncpa [#allocation7], 1 }
  0x5e   :  { %136 = vsyncpa [#allocation5], 1 }

</bundles_post_ra>
